<compile_context>
chip_gen: v7x
topology: tpu7x:2x2x1
jax: 0.10.0
libtpu: 0.0.40
codegen_flags: <defaults>
</compile_context>

<pallas_src>
import functools

import jax
import jax.numpy as jnp
from jax.experimental import pallas as pl
from jax.experimental.pallas import tpu as pltpu


# -----------------------------------------------------------------------------
# Parameter packing: one lane-dense (rows, 128) f32 slab, 8-row-aligned regions.
#   rows [0, 8)          : W0^T   at rows [0, 6),        cols [0, middle)
#   rows [8, 8+m_al)     : W1^T   at rows [8, 8+middle), cols [0, 4)
#   row  r2 = 8 + m_al   : b0     at cols [0, middle)
#   row  r3 = r2 + 8     : b1     at cols [0, 4)
# -----------------------------------------------------------------------------
def pack_params(w0, b0, w1, b1):
    middle = w0.shape[0]
    m_al = ((middle + 7) // 8) * 8
    r1 = 8
    r2 = r1 + m_al
    r3 = r2 + 8
    rows = r3 + 8
    slab = jnp.zeros((rows, 128), jnp.float32)
    slab = slab.at[0:6, 0:middle].set(jnp.transpose(w0).astype(jnp.float32))
    slab = slab.at[r1:r1 + middle, 0:4].set(jnp.transpose(w1).astype(jnp.float32))
    slab = slab.at[r2, 0:middle].set(b0.astype(jnp.float32))
    slab = slab.at[r3, 0:4].set(b1.astype(jnp.float32))
    return slab, (r1, r2, r3)


def _mlp_rows(x4, a2, p_ref, *, middle, r1, r2, r3):
    """Shared VPU math: rows of state (N,4) and action (N,2) -> (N,4) delta+res.

    h[n, j] = relu(b0[j] + sum_k x[n,k] * W0[j,k])
    y[n, i] = b1[i] + sum_j h[n,j] * W1[i,j]
    returns x4 + y   (the module's residual `x[:4] + y`)
    """
    # Layer 0: unrolled broadcast-MAC over the K=6 contraction (VPU only).
    h = p_ref[r2:r2 + 1, 0:middle]                       # (1, middle) b0
    for k in range(4):
        h = h + x4[:, k:k + 1] * p_ref[k:k + 1, 0:middle]
    for k in range(2):
        h = h + a2[:, k:k + 1] * p_ref[4 + k:5 + k, 0:middle]
    h = jnp.maximum(h, 0.0)                              # (N, middle)

    # Layer 1: unrolled broadcast-MAC over the `middle` contraction.
    y = p_ref[r3:r3 + 1, 0:4]                            # (1, 4) b1
    for j in range(middle):
        y = y + h[:, j:j + 1] * p_ref[r1 + j:r1 + j + 1, 0:4]

    return x4 + y                                        # (N, 4)


# -----------------------------------------------------------------------------
# Kernel 1: batched forward  (B, 6) -> (B, 4)
# -----------------------------------------------------------------------------
def _forward_kernel(x_ref, p_ref, o_ref, *, middle, r1, r2, r3):
    x = x_ref[...]                                       # (TB, 6)
    o_ref[...] = _mlp_rows(x[:, 0:4], x[:, 4:6], p_ref,
                           middle=middle, r1=r1, r2=r2, r3=r3)


def make_cloner_forward(w0, b0, w1, b1, *, block_b=256):
    middle = w0.shape[0]
    packed, (r1, r2, r3) = pack_params(w0, b0, w1, b1)
    kern = functools.partial(_forward_kernel, middle=middle, r1=r1, r2=r2, r3=r3)

    def build(B):
        tb = min(block_b, B)
        assert B % tb == 0 and tb % 8 == 0, "batch must tile into multiples of 8"
        return pl.pallas_call(
            kern,
            out_shape=jax.ShapeDtypeStruct((B, 4), jnp.float32),
            grid_spec=pltpu.PrefetchScalarGridSpec(
                num_scalar_prefetch=0,
                grid=(B // tb,),
                in_specs=[pl.BlockSpec((tb, 6), lambda i: (i, 0)),
                          pl.BlockSpec(packed.shape, lambda i: (0, 0))],
                out_specs=pl.BlockSpec((tb, 4), lambda i: (i, 0)),
            ),
            compiler_params=pltpu.CompilerParams(
                dimension_semantics=("parallel",)),   # v7x: split batch across TCs
        )

    @jax.jit
    def forward(x):          # x: (B, 6) f32
        return build(x.shape[0])(x, packed)

    return forward


# -----------------------------------------------------------------------------
# Kernel 2: fused rollout.  grid=(T,), state carried in VMEM scratch; the param
# slab has a constant index_map so it is DMA'd once and stays VMEM-resident.
# Each grid step applies exactly the module forward to every environment row.
# -----------------------------------------------------------------------------
def _rollout_kernel(s0_ref, a_ref, p_ref, o_ref, s_ref, *, middle, r1, r2, r3):
    t = pl.program_id(0)

    @pl.when(t == 0)
    def _():
        s_ref[...] = s0_ref[...]                         # init carried state

    s = s_ref[...]                                       # (B, 4)
    a = a_ref[0]                                         # (B, 2)
    s_new = _mlp_rows(s, a, p_ref, middle=middle, r1=r1, r2=r2, r3=r3)
    s_ref[...] = s_new                                   # carry to next step
    o_ref[0] = s_new                                     # record trajectory


def make_cloner_rollout(w0, b0, w1, b1):
    middle = w0.shape[0]
    packed, (r1, r2, r3) = pack_params(w0, b0, w1, b1)
    kern = functools.partial(_rollout_kernel, middle=middle, r1=r1, r2=r2, r3=r3)

    @jax.jit
    def rollout(s0, actions):    # s0: (B, 4) f32, actions: (T, B, 2) f32
        T, B, _ = actions.shape
        call = pl.pallas_call(
            kern,
            out_shape=jax.ShapeDtypeStruct((T, B, 4), jnp.float32),
            grid_spec=pltpu.PrefetchScalarGridSpec(
                num_scalar_prefetch=0,
                grid=(T,),
                in_specs=[pl.BlockSpec((B, 4), lambda t: (0, 0)),
                          pl.BlockSpec((1, B, 2), lambda t: (t, 0, 0)),
                          pl.BlockSpec(packed.shape, lambda t: (0, 0))],
                out_specs=pl.BlockSpec((1, B, 4), lambda t: (t, 0, 0)),
                scratch_shapes=[pltpu.VMEM((B, 4), jnp.float32)],
            ),
            compiler_params=pltpu.CompilerParams(
                dimension_semantics=("arbitrary",)),     # sequential in time
        )
        return call(s0, actions, packed)

    return rollout


# -----------------------------------------------------------------------------
# Pure-JAX reference (exact f32 accumulation; per-row module semantics).
# -----------------------------------------------------------------------------
def _reference_forward(x, w0, b0, w1, b1):
    hi = jax.lax.Precision.HIGHEST
    h = jnp.maximum(jnp.dot(x, w0.T, precision=hi) + b0, 0.0)
    y = jnp.dot(h, w1.T, precision=hi) + b1
    return x[..., :4] + y      # module's `x[:4] + y`, applied per row


if __name__ == "__main__":
    middle = 4
    key = jax.random.PRNGKey(0)
    k_x, k_s, k_a, k_w0, k_b0, k_w1, k_b1 = jax.random.split(key, 7)

    # Deterministic parameter init (mimics PyTorch uniform(-1/sqrt(fan_in), .)).
    bound0 = 1.0 / jnp.sqrt(6.0)
    bound1 = 1.0 / jnp.sqrt(float(middle))
    w0 = jax.random.uniform(k_w0, (middle, 6), jnp.float32, -bound0, bound0)
    b0 = jax.random.uniform(k_b0, (middle,), jnp.float32, -bound0, bound0)
    w1 = jax.random.uniform(k_w1, (4, middle), jnp.float32, -bound1, bound1)
    b1 = jax.random.uniform(k_b1, (4,), jnp.float32, -bound1, bound1)

    # --- Batched forward: (B, 6) -> (B, 4) ------------------------------------
    B = 256
    x = jax.random.normal(k_x, (B, 6), jnp.float32)
    forward = make_cloner_forward(w0, b0, w1, b1, block_b=128)
    out = jax.block_until_ready(forward(x))
    ref = _reference_forward(x, w0, b0, w1, b1)
    assert out.shape == (B, 4)
    assert jnp.allclose(out, ref, atol=1e-5, rtol=1e-5), (
        float(jnp.max(jnp.abs(out - ref))))

    # --- Fused rollout: T forwards with the loop inside the kernel ------------
    T, Benv = 32, 8
    s0 = jax.random.normal(k_s, (Benv, 4), jnp.float32)
    actions = jax.random.normal(k_a, (T, Benv, 2), jnp.float32)
    rollout = make_cloner_rollout(w0, b0, w1, b1)
    traj = jax.block_until_ready(rollout(s0, actions))

    s = s0
    ref_steps = []
    for t in range(T):
        xt = jnp.concatenate([s, actions[t]], axis=-1)
        s = _reference_forward(xt, w0, b0, w1, b1)
        ref_steps.append(s)
    ref_traj = jnp.stack(ref_steps, axis=0)
    assert traj.shape == (T, Benv, 4)
    assert jnp.allclose(traj, ref_traj, atol=1e-4, rtol=1e-4), (
        float(jnp.max(jnp.abs(traj - ref_traj))))

    print("KERNEL_OK")
</pallas_src>

<mosaic_0001>
module attributes {stable_mosaic.version = 11 : i64} {
  func.func @_forward_kernel(%arg0: i32, %arg1: memref<128x6xf32, #tpu.memory_space<vmem>>, %arg2: memref<32x128xf32, #tpu.memory_space<vmem>>, %arg3: memref<128x4xf32, #tpu.memory_space<vmem>>) attributes {dimension_semantics = [#tpu.dimension_semantics<parallel>], iteration_bounds = array<i64: 2>, scalar_prefetch = 0 : i64, scratch_operands = 0 : i64, tpu.core_type = #tpu.core_type<tc>, window_params = [{transform_indices = @transform_0, window_bounds = array<i64: 128, 6>}, {pipeline_mode = #tpu.pipeline_mode<synchronous>, transform_indices = @transform_1, window_bounds = array<i64: 32, 128>}, {transform_indices = @transform_2, window_bounds = array<i64: 128, 4>}]} {
    %c0 = arith.constant 0 : index
    %c0_0 = arith.constant 0 : index
    %0 = vector.load %arg1[%c0, %c0_0] : memref<128x6xf32, #tpu.memory_space<vmem>>, vector<128x6xf32>
    %1 = vector.extract_strided_slice %0 {offsets = [0, 0], sizes = [128, 4], strides = [1, 1]} : vector<128x6xf32> to vector<128x4xf32>
    %2 = vector.extract_strided_slice %0 {offsets = [0, 4], sizes = [128, 2], strides = [1, 1]} : vector<128x6xf32> to vector<128x2xf32>
    %c16 = arith.constant 16 : index
    %c0_1 = arith.constant 0 : index
    %3 = vector.load %arg2[%c16, %c0_1] : memref<32x128xf32, #tpu.memory_space<vmem>>, vector<1x4xf32>
    %4 = vector.extract_strided_slice %1 {offsets = [0, 0], sizes = [128, 1], strides = [1, 1]} : vector<128x4xf32> to vector<128x1xf32>
    %c0_2 = arith.constant 0 : index
    %c0_3 = arith.constant 0 : index
    %5 = vector.load %arg2[%c0_2, %c0_3] : memref<32x128xf32, #tpu.memory_space<vmem>>, vector<1x4xf32>
    %6 = vector.broadcast %4 : vector<128x1xf32> to vector<128x4xf32>
    %7 = vector.broadcast %5 : vector<1x4xf32> to vector<128x4xf32>
    %8 = arith.mulf %6, %7 : vector<128x4xf32>
    %9 = vector.broadcast %3 : vector<1x4xf32> to vector<128x4xf32>
    %10 = arith.addf %9, %8 : vector<128x4xf32>
    %11 = vector.extract_strided_slice %1 {offsets = [0, 1], sizes = [128, 1], strides = [1, 1]} : vector<128x4xf32> to vector<128x1xf32>
    %c1 = arith.constant 1 : index
    %c0_4 = arith.constant 0 : index
    %12 = vector.load %arg2[%c1, %c0_4] : memref<32x128xf32, #tpu.memory_space<vmem>>, vector<1x4xf32>
    %13 = vector.broadcast %11 : vector<128x1xf32> to vector<128x4xf32>
    %14 = vector.broadcast %12 : vector<1x4xf32> to vector<128x4xf32>
    %15 = arith.mulf %13, %14 : vector<128x4xf32>
    %16 = arith.addf %10, %15 : vector<128x4xf32>
    %17 = vector.extract_strided_slice %1 {offsets = [0, 2], sizes = [128, 1], strides = [1, 1]} : vector<128x4xf32> to vector<128x1xf32>
    %c2 = arith.constant 2 : index
    %c0_5 = arith.constant 0 : index
    %18 = vector.load %arg2[%c2, %c0_5] : memref<32x128xf32, #tpu.memory_space<vmem>>, vector<1x4xf32>
    %19 = vector.broadcast %17 : vector<128x1xf32> to vector<128x4xf32>
    %20 = vector.broadcast %18 : vector<1x4xf32> to vector<128x4xf32>
    %21 = arith.mulf %19, %20 : vector<128x4xf32>
    %22 = arith.addf %16, %21 : vector<128x4xf32>
    %23 = vector.extract_strided_slice %1 {offsets = [0, 3], sizes = [128, 1], strides = [1, 1]} : vector<128x4xf32> to vector<128x1xf32>
    %c3 = arith.constant 3 : index
    %c0_6 = arith.constant 0 : index
    %24 = vector.load %arg2[%c3, %c0_6] : memref<32x128xf32, #tpu.memory_space<vmem>>, vector<1x4xf32>
    %25 = vector.broadcast %23 : vector<128x1xf32> to vector<128x4xf32>
    %26 = vector.broadcast %24 : vector<1x4xf32> to vector<128x4xf32>
    %27 = arith.mulf %25, %26 : vector<128x4xf32>
    %28 = arith.addf %22, %27 : vector<128x4xf32>
    %29 = vector.extract_strided_slice %2 {offsets = [0, 0], sizes = [128, 1], strides = [1, 1]} : vector<128x2xf32> to vector<128x1xf32>
    %c4 = arith.constant 4 : index
    %c0_7 = arith.constant 0 : index
    %30 = vector.load %arg2[%c4, %c0_7] : memref<32x128xf32, #tpu.memory_space<vmem>>, vector<1x4xf32>
    %31 = vector.broadcast %29 : vector<128x1xf32> to vector<128x4xf32>
    %32 = vector.broadcast %30 : vector<1x4xf32> to vector<128x4xf32>
    %33 = arith.mulf %31, %32 : vector<128x4xf32>
    %34 = arith.addf %28, %33 : vector<128x4xf32>
    %35 = vector.extract_strided_slice %2 {offsets = [0, 1], sizes = [128, 1], strides = [1, 1]} : vector<128x2xf32> to vector<128x1xf32>
    %c5 = arith.constant 5 : index
    %c0_8 = arith.constant 0 : index
    %36 = vector.load %arg2[%c5, %c0_8] : memref<32x128xf32, #tpu.memory_space<vmem>>, vector<1x4xf32>
    %37 = vector.broadcast %35 : vector<128x1xf32> to vector<128x4xf32>
    %38 = vector.broadcast %36 : vector<1x4xf32> to vector<128x4xf32>
    %39 = arith.mulf %37, %38 : vector<128x4xf32>
    %40 = arith.addf %34, %39 : vector<128x4xf32>
    %cst = arith.constant 0.000000e+00 : f32
    %41 = vector.broadcast %cst : f32 to vector<128x4xf32>
    %42 = arith.maximumf %40, %41 : vector<128x4xf32>
    %c24 = arith.constant 24 : index
    %c0_9 = arith.constant 0 : index
    %43 = vector.load %arg2[%c24, %c0_9] : memref<32x128xf32, #tpu.memory_space<vmem>>, vector<1x4xf32>
    %44 = vector.extract_strided_slice %42 {offsets = [0, 0], sizes = [128, 1], strides = [1, 1]} : vector<128x4xf32> to vector<128x1xf32>
    %c8 = arith.constant 8 : index
    %c0_10 = arith.constant 0 : index
    %45 = vector.load %arg2[%c8, %c0_10] : memref<32x128xf32, #tpu.memory_space<vmem>>, vector<1x4xf32>
    %46 = vector.broadcast %44 : vector<128x1xf32> to vector<128x4xf32>
    %47 = vector.broadcast %45 : vector<1x4xf32> to vector<128x4xf32>
    %48 = arith.mulf %46, %47 : vector<128x4xf32>
    %49 = vector.broadcast %43 : vector<1x4xf32> to vector<128x4xf32>
    %50 = arith.addf %49, %48 : vector<128x4xf32>
    %51 = vector.extract_strided_slice %42 {offsets = [0, 1], sizes = [128, 1], strides = [1, 1]} : vector<128x4xf32> to vector<128x1xf32>
    %c9 = arith.constant 9 : index
    %c0_11 = arith.constant 0 : index
    %52 = vector.load %arg2[%c9, %c0_11] : memref<32x128xf32, #tpu.memory_space<vmem>>, vector<1x4xf32>
    %53 = vector.broadcast %51 : vector<128x1xf32> to vector<128x4xf32>
    %54 = vector.broadcast %52 : vector<1x4xf32> to vector<128x4xf32>
    %55 = arith.mulf %53, %54 : vector<128x4xf32>
    %56 = arith.addf %50, %55 : vector<128x4xf32>
    %57 = vector.extract_strided_slice %42 {offsets = [0, 2], sizes = [128, 1], strides = [1, 1]} : vector<128x4xf32> to vector<128x1xf32>
    %c10 = arith.constant 10 : index
    %c0_12 = arith.constant 0 : index
    %58 = vector.load %arg2[%c10, %c0_12] : memref<32x128xf32, #tpu.memory_space<vmem>>, vector<1x4xf32>
    %59 = vector.broadcast %57 : vector<128x1xf32> to vector<128x4xf32>
    %60 = vector.broadcast %58 : vector<1x4xf32> to vector<128x4xf32>
    %61 = arith.mulf %59, %60 : vector<128x4xf32>
    %62 = arith.addf %56, %61 : vector<128x4xf32>
    %63 = vector.extract_strided_slice %42 {offsets = [0, 3], sizes = [128, 1], strides = [1, 1]} : vector<128x4xf32> to vector<128x1xf32>
    %c11 = arith.constant 11 : index
    %c0_13 = arith.constant 0 : index
    %64 = vector.load %arg2[%c11, %c0_13] : memref<32x128xf32, #tpu.memory_space<vmem>>, vector<1x4xf32>
    %65 = vector.broadcast %63 : vector<128x1xf32> to vector<128x4xf32>
    %66 = vector.broadcast %64 : vector<1x4xf32> to vector<128x4xf32>
    %67 = arith.mulf %65, %66 : vector<128x4xf32>
    %68 = arith.addf %62, %67 : vector<128x4xf32>
    %69 = arith.addf %1, %68 : vector<128x4xf32>
    %c0_14 = arith.constant 0 : index
    %c0_15 = arith.constant 0 : index
    %70 = vector.load %arg3[%c0_14, %c0_15] : memref<128x4xf32, #tpu.memory_space<vmem>>, vector<128x4xf32>
    tpu.vector_store %arg3[%c0_14, %c0_15], %69 {strides = array<i32>} : memref<128x4xf32, #tpu.memory_space<vmem>>, vector<128x4xf32>,
    return
  }
  func.func @transform_0(%arg0: i32) -> (i32, i32) {
    %c0_i32 = arith.constant 0 : i32
    %c0_i32_0 = arith.constant 0 : i32
    return %arg0, %c0_i32 : i32, i32
  }
  func.func @transform_1(%arg0: i32) -> (i32, i32) {
    %c0_i32 = arith.constant 0 : i32
    %c0_i32_0 = arith.constant 0 : i32
    %c0_i32_1 = arith.constant 0 : i32
    return %c0_i32, %c0_i32_0 : i32, i32
  }
  func.func @transform_2(%arg0: i32) -> (i32, i32) {
    %c0_i32 = arith.constant 0 : i32
    %c0_i32_0 = arith.constant 0 : i32
    return %arg0, %c0_i32 : i32, i32
  }
}

</mosaic_0001>

<bundles_post_ra>
// kernel: forward.1
= control target key start
LH: loop header
LB: loop body
LE: loop exit
PB: predicated region body
PF: predicated region fallthrough
CT: control target
= control target key end

     0   :  { %s1421_s9 = smov 0   ;;  %s2364_s0 = inlined_call_operand.vmem [shape: f32[256,6], index: 0, kind: input, shape index: {}]   ;;  %s2365_s1 = inlined_call_operand.vmem [shape: f32[32,128], index: 1, kind: input, shape index: {}]   ;;  %s2366_s2 = inlined_call_operand.vmem [shape: f32[256,4], index: 2, kind: output, shape index: {}]  }
   0x1 LB: > { %s1320_s10 = sadd.s32 4294967295, %s1398_s9   ;;  %p1324_p0 = scmp.ge.s32.totalorder %s1398_s9, 1  ;;  %s1398_s9 = sphi %s1421_s9, %s12_s9  }
   0x2   : > { %p113_p1 = scmp.lt.s32.totalorder %s1398_s9, 3 }
   0x4   : > { %p114_p2 = pnand %p1324_p0, %p113_p1 }
   0x6   : > { %117 = sbr.rel (%p114_p2) target bundleno = 740 (0x2e4), region = 28 }
   0xd   : > { %s1325_s11 = sshll.u32 %s1320_s10, 4  ;;  %v2371_v0 = vmov 1   ;;  %v1401_v1 = vmov 0   ;;  %v2369_v12 = vmov 2   ;;  %v2367_v19 = vmov 3  }
   0xe   : > { %1358 = vset.pattern.permute.xlu0 %v2371_v0  ;;  %1357 = vset.pattern.permute.xlu1 %v1401_v1  ;;  %p136_p3 = scmp.lt.s32.totalorder %s1325_s11, 31  ;;  %v1404_v20 = vmov 4   ;;  %v1405_v21 = vmov 5   ;;  %vm1247_vm0 = vcmask 31744  }
  0x10   : > { %s2432_s11 = smov (!%p136_p3, %s1325_s11), 31 }
  0x11   : > { %s1326_s12 = sshll.u32 %s2432_s11, 3 }
  0x12   : > { %s1439_s15 = scalar_lea.vmem %s2364_s0, %s1326_s12  ;;  %s2246_s18 = scalar_lea.vmem %s2366_s2, %s1326_s12 }
  0x13   : > { %v1442_v2 = vld [vmem:[%s1439_s15 + $0x10] sm:$0xff]  ;;  %v1445_v3 = vld [vmem:[%s1439_s15] sm:$0xff]  ;;  %v1450_v4 = vld [vmem:[%s1439_s15 + $0x18] sm:$0xff] }
  0x14   : > { %177 = vperm.xlu1 %1357, %v1442_v2   ;;  %287 = vperm.xlu0 %1358, %v1445_v3   ;;  %v1455_v5 = vld [vmem:[%s1439_s15 + $0x28] sm:$0xff]  ;;  %v1460_v6 = vld [vmem:[%s1439_s15 + $0x38] sm:$0xff]  ;;  %v1489_v13 = vld [vmem:[%s1439_s15 + $0x20] sm:$0xff] }
  0x15   : > { %v1465_v7 = vld [vmem:[%s1439_s15 + $0x48] sm:$0xff]  ;;  %v1470_v8 = vld [vmem:[%s1439_s15 + $0x58] sm:$0xff]  ;;  %v1495_v14 = vld [vmem:[%s1439_s15 + $0x30] sm:$0xff] }
  0x16   : > { %v1475_v9 = vld [vmem:[%s1439_s15 + $0x68] sm:$0xff]  ;;  %v1480_v10 = vld [vmem:[%s1439_s15 + $0x78] sm:$0xff]  ;;  %v1500_v15 = vld [vmem:[%s1439_s15 + $0x40] sm:$0xff] }
  0x17   : > { %2374 = vst [vmem:[#allocation2_spill] sm:$0xff] %v1480_v10  ;;  %v1483_v11 = vld [vmem:[%s1439_s15 + $0x8] sm:$0xff]  ;;  %v1505_v16 = vld [vmem:[%s1439_s15 + $0x50] sm:$0xff]  ;;  %v1510_v17 = vld [vmem:[%s1439_s15 + $0x60] sm:$0xff] }
  0x18   : > { %182 = vperm.xlu1 %1357, %v1450_v4   ;;  %299 = vperm.xlu0 %1358, %v1450_v4   ;;  %v1515_v18 = vld [vmem:[%s1439_s15 + $0x70] sm:$0xff] }
  0x1c   : > { %192 = vperm.xlu1 %1357, %v1455_v5   ;;  %307 = vperm.xlu0 %1358, %v1455_v5  }
  0x20   : > { %202 = vperm.xlu1 %1357, %v1460_v6   ;;  %315 = vperm.xlu0 %1358, %v1460_v6  }
  0x24   : > { %212 = vperm.xlu1 %1357, %v1465_v7   ;;  %323 = vperm.xlu0 %1358, %v1465_v7  }
  0x28   : > { %222 = vperm.xlu1 %1357, %v1470_v8   ;;  %331 = vperm.xlu0 %1358, %v1470_v8  }
  0x2c   : > { %232 = vperm.xlu1 %1357, %v1475_v9   ;;  %339 = vperm.xlu0 %1358, %v1475_v9  }
  0x30   : > { %242 = vperm.xlu1 %1357, %v1480_v10   ;;  %1361 = vset.pattern.permute.xlu0 %v2369_v12 }
  0x31   : > { %392 = vperm.xlu0 %1361, %v1483_v11  }
  0x34   : > { %1359 = vset.pattern.permute.xlu1 %v2371_v0 }
  0x35   : > { %291 = vperm.xlu1 %1359, %v1483_v11   ;;  %404 = vperm.xlu0 %1361, %v1489_v13  }
  0x39   : > { %295 = vperm.xlu1 %1359, %v1442_v2   ;;  %412 = vperm.xlu0 %1361, %v1495_v14  }
  0x3d   : > { %303 = vperm.xlu1 %1359, %v1489_v13   ;;  %420 = vperm.xlu0 %1361, %v1500_v15  }
  0x41   : > { %311 = vperm.xlu1 %1359, %v1495_v14   ;;  %428 = vperm.xlu0 %1361, %v1505_v16  }
  0x45   : > { %319 = vperm.xlu1 %1359, %v1500_v15   ;;  %436 = vperm.xlu0 %1361, %v1510_v17  }
  0x49   : > { %327 = vperm.xlu1 %1359, %v1505_v16   ;;  %444 = vperm.xlu0 %1361, %v1515_v18  }
  0x4d   : > { %335 = vperm.xlu1 %1359, %v1510_v17   ;;  %1362 = vset.pattern.permute.xlu0 %v2367_v19 }
  0x4e   : > { %489 = vperm.xlu0 %1362, %v1445_v3  }
  0x51   : > { %343 = vperm.xlu1 %1359, %v1515_v18  }
  0x52   : > { %501 = vperm.xlu0 %1362, %v1450_v4  }
  0x55   : > { %1360 = vset.pattern.permute.xlu1 %v2369_v12 }
  0x56   : > { %388 = vperm.xlu1 %1360, %v1445_v3   ;;  %509 = vperm.xlu0 %1362, %v1455_v5  }
  0x5a   : > { %396 = vperm.xlu1 %1360, %v1442_v2   ;;  %517 = vperm.xlu0 %1362, %v1460_v6  }
  0x5e   : > { %400 = vperm.xlu1 %1360, %v1450_v4   ;;  %525 = vperm.xlu0 %1362, %v1465_v7  }
  0x62   : > { %408 = vperm.xlu1 %1360, %v1455_v5   ;;  %533 = vperm.xlu0 %1362, %v1470_v8  }
  0x66   : > { %416 = vperm.xlu1 %1360, %v1460_v6   ;;  %541 = vperm.xlu0 %1362, %v1475_v9  }
  0x6a   : > { %424 = vperm.xlu1 %1360, %v1465_v7   ;;  %549 = vperm.xlu0 %1362, %v1480_v10  }
  0x6e   : > { %432 = vperm.xlu1 %1360, %v1470_v8   ;;  %1365 = vset.pattern.permute.xlu0 %v1404_v20 }
  0x6f   : > { %594 = vperm.xlu0 %1365, %v1483_v11  }
  0x72   : > { %440 = vperm.xlu1 %1360, %v1475_v9  }
  0x73   : > { %606 = vperm.xlu0 %1365, %v1489_v13  }
  0x76   : > { %448 = vperm.xlu1 %1360, %v1480_v10  }
  0x77   : > { %614 = vperm.xlu0 %1365, %v1495_v14  }
  0x7a   : > { %1363 = vset.pattern.permute.xlu1 %v2367_v19 }
  0x7b   : > { %493 = vperm.xlu1 %1363, %v1483_v11   ;;  %622 = vperm.xlu0 %1365, %v1500_v15  }
  0x7f   : > { %497 = vperm.xlu1 %1363, %v1442_v2   ;;  %630 = vperm.xlu0 %1365, %v1505_v16  }
  0x83   : > { %505 = vperm.xlu1 %1363, %v1489_v13   ;;  %638 = vperm.xlu0 %1365, %v1510_v17  }
  0x87   : > { %513 = vperm.xlu1 %1363, %v1495_v14   ;;  %646 = vperm.xlu0 %1365, %v1515_v18  }
  0x8b   : > { %521 = vperm.xlu1 %1363, %v1500_v15   ;;  %1366 = vset.pattern.permute.xlu0 %v1405_v21 }
  0x8c   : > { %691 = vperm.xlu0 %1366, %v1445_v3  }
  0x8f   : > { %529 = vperm.xlu1 %1363, %v1505_v16  }
  0x90   : > { %703 = vperm.xlu0 %1366, %v1450_v4  }
  0x93   : > { %v1556_v22 = vpop.permute.xlu1 %177  ;;  %537 = vperm.xlu1 %1363, %v1510_v17   ;;  %v1559_v23 = vpop.permute.xlu0 %287 }
  0x94   : > { %711 = vperm.xlu0 %1366, %v1455_v5  }
  0x97   : > { %v1562_v24 = vpop.permute.xlu1 %182  ;;  %545 = vperm.xlu1 %1363, %v1515_v18   ;;  %v1565_v25 = vpop.permute.xlu0 %299 }
  0x98   : > { %719 = vperm.xlu0 %1366, %v1460_v6  }
  0x9b   : > { %v1568_v26 = vpop.permute.xlu1 %192  ;;  %1364 = vset.pattern.permute.xlu1 %v1404_v20  ;;  %v1570_v27 = vpop.permute.xlu0 %307 }
  0x9c   : > { %590 = vperm.xlu1 %1364, %v1445_v3   ;;  %727 = vperm.xlu0 %1366, %v1465_v7  }
  0x9f   : > { %v1574_v28 = vpop.permute.xlu1 %202  ;;  %v1576_v29 = vpop.permute.xlu0 %315 }
  0xa0   : > { %598 = vperm.xlu1 %1364, %v1442_v2   ;;  %735 = vperm.xlu0 %1366, %v1470_v8  }
  0xa3   : > { %v1580_v30 = vpop.permute.xlu1 %212  ;;  %v1582_v31 = vpop.permute.xlu0 %323 }
  0xa4   : > { %602 = vperm.xlu1 %1364, %v1450_v4   ;;  %743 = vperm.xlu0 %1366, %v1475_v9  }
  0xa7   : > { %v1586_v32 = vpop.permute.xlu1 %222  ;;  %v1588_v33 = vpop.permute.xlu0 %331 }
  0xa8   : > { %610 = vperm.xlu1 %1364, %v1455_v5   ;;  %751 = vperm.xlu0 %1366, %v1480_v10  }
  0xab   : > { %v1592_v34 = vpop.permute.xlu1 %232  ;;  %v1594_v35 = vpop.permute.xlu0 %339 }
  0xac   : > { %618 = vperm.xlu1 %1364, %v1460_v6   ;;  %1368 = vset.pattern.permute.xlu0 %v1401_v1 }
  0xad   : > { %167 = vperm.xlu0 %1368, %v1445_v3  }
  0xaf   : > { %v1599_v36 = vpop.permute.xlu1 %242 }
  0xb0   : > { %2375 = vst [vmem:[#allocation3_spill] sm:$0xff] %v1599_v36  ;;  %626 = vperm.xlu1 %1364, %v1465_v7   ;;  %v1602_v37 = vpop.permute.xlu0 %392 }
  0xb1   : > { %172 = vperm.xlu0 %1368, %v1483_v11  }
  0xb4   : > { %v1605_v38 = vpop.permute.xlu1 %291  ;;  %634 = vperm.xlu1 %1364, %v1470_v8   ;;  %v1608_v39 = vpop.permute.xlu0 %404 }
  0xb5   : > { %187 = vperm.xlu0 %1368, %v1489_v13  }
  0xb8   : > { %v1611_v40 = vpop.permute.xlu1 %295  ;;  %642 = vperm.xlu1 %1364, %v1475_v9   ;;  %v1614_v41 = vpop.permute.xlu0 %412 }
  0xb9   : > { %197 = vperm.xlu0 %1368, %v1495_v14  }
  0xbc   : > { %v1617_v42 = vpop.permute.xlu1 %303  ;;  %650 = vperm.xlu1 %1364, %v1480_v10   ;;  %v1620_v43 = vpop.permute.xlu0 %420 }
  0xbd   : > { %207 = vperm.xlu0 %1368, %v1500_v15  }
  0xc0   : > { %v1623_v44 = vpop.permute.xlu1 %311  ;;  %1367 = vset.pattern.permute.xlu1 %v1405_v21  ;;  %v1625_v45 = vpop.permute.xlu0 %428 }
  0xc1   : > { %695 = vperm.xlu1 %1367, %v1483_v11   ;;  %217 = vperm.xlu0 %1368, %v1505_v16  }
  0xc4   : > { %v1629_v46 = vpop.permute.xlu1 %319  ;;  %v1631_v47 = vpop.permute.xlu0 %436 }
  0xc5   : > { %699 = vperm.xlu1 %1367, %v1442_v2   ;;  %227 = vperm.xlu0 %1368, %v1510_v17  }
  0xc8   : > { %v1635_v48 = vpop.permute.xlu1 %327  ;;  %v1637_v49 = vpop.permute.xlu0 %444 }
  0xc9   : > { %707 = vperm.xlu1 %1367, %v1489_v13   ;;  %237 = vperm.xlu0 %1368, %v1515_v18  }
  0xcc   : > { %v1641_v50 = vpop.permute.xlu1 %335 }
  0xcd   : > { %715 = vperm.xlu1 %1367, %v1495_v14   ;;  %v1644_v51 = vpop.permute.xlu0 %489 }
  0xd0   : > { %v1646_v52 = vpop.permute.xlu1 %343 }
  0xd1   : > { %723 = vperm.xlu1 %1367, %v1500_v15   ;;  %v1649_v53 = vpop.permute.xlu0 %501 }
  0xd5   : > { %731 = vperm.xlu1 %1367, %v1505_v16   ;;  %v1652_v54 = vpop.permute.xlu1 %388  ;;  %v1654_v55 = vpop.permute.xlu0 %509 }
  0xd9   : > { %739 = vperm.xlu1 %1367, %v1510_v17   ;;  %v1657_v56 = vpop.permute.xlu1 %396  ;;  %v1659_v57 = vpop.permute.xlu0 %517 }
  0xdd   : > { %747 = vperm.xlu1 %1367, %v1515_v18   ;;  %v1662_v58 = vpop.permute.xlu1 %400  ;;  %v1664_v59 = vpop.permute.xlu0 %525 }
  0xe1   : > { %v1666_v60 = vpop.permute.xlu1 %408  ;;  %v1668_v61 = vpop.permute.xlu0 %533  ;;  %1369 = vset.pattern.permute.xlu1 %v1401_v1 }
  0xe2   : > { %2376 = vst [vmem:[#allocation4_spill] sm:$0xff] %v1668_v61 }
  0xe5   : > { %v1671_v62 = vpop.permute.xlu1 %416  ;;  %v1673_v63 = vpop.permute.xlu0 %541 }
  0xe6   : > { %2377 = vst [vmem:[#allocation5_spill] sm:$0xff] %v1673_v63 }
  0xe9   : > { %v1675_v2 = vpop.permute.xlu1 %424  ;;  %v1677_v3 = vpop.permute.xlu0 %549 }
  0xea   : > { %2378 = vst [vmem:[#allocation6_spill] sm:$0xff] %v1677_v3 }
  0xed   : > { %v1679_v4 = vpop.permute.xlu1 %432 }
  0xee   : > { %2379 = vst [vmem:[#allocation7_spill] sm:$0xff] %v1679_v4  ;;  %v1681_v5 = vpop.permute.xlu0 %594 }
  0xf1   : > { %v1683_v6 = vpop.permute.xlu1 %440 }
  0xf2   : > { %2380 = vst [vmem:[#allocation8_spill] sm:$0xff] %v1683_v6  ;;  %v1685_v7 = vpop.permute.xlu0 %606  ;;  %v1756_v6 = vld [vmem:[%s2365_s1 + $0x10] ss:$0 sm:$0xff] }
  0xf3   : > { %2381 = vst [vmem:[#allocation9_spill] sm:$0xff] %v1685_v7 }
  0xf5   : > { %v1687_v8 = vpop.permute.xlu1 %448 }
  0xf6   : > { %2382 = vst [vmem:[#allocation10_spill] sm:$0xff] %v1687_v8  ;;  %v1689_v9 = vpop.permute.xlu0 %614 }
  0xf7   : > { %2383 = vst [vmem:[#allocation11_spill] sm:$0xff] %v1689_v9 }
  0xfa   : > { %v1691_v1 = vpop.permute.xlu1 %493  ;;  %v1693_v11 = vpop.permute.xlu0 %622 }
  0xfb   : > { %2384 = vst [vmem:[#allocation12_spill] sm:$0xff] %v1693_v11 }
  0xfe   : > { %v1695_v13 = vpop.permute.xlu1 %497  ;;  %v1697_v14 = vpop.permute.xlu0 %630 }
  0xff   : > { %2385 = vst [vmem:[#allocation13_spill] sm:$0xff] %v1697_v14 }
 0x102   : > { %v1699_v15 = vpop.permute.xlu1 %505  ;;  %v1701_v16 = vpop.permute.xlu0 %638 }
 0x103   : > { %2386 = vst [vmem:[#allocation14_spill] sm:$0xff] %v1701_v16 }
 0x106   : > { %v1703_v17 = vpop.permute.xlu1 %513  ;;  %v1705_v18 = vpop.permute.xlu0 %646 }
 0x107   : > { %2387 = vst [vmem:[#allocation15_spill] sm:$0xff] %v1703_v17  ;;  %2388 = vst [vmem:[#allocation16_spill] sm:$0xff] %v1705_v18 }
 0x10a   : > { %v1707_v20 = vpop.permute.xlu1 %521 }
 0x10b   : > { %2389 = vst [vmem:[#allocation17_spill] sm:$0xff] %v1707_v20  ;;  %v1709_v21 = vpop.permute.xlu0 %691 }
 0x10e   : > { %v1711_v19 = vpop.permute.xlu1 %529 }
 0x10f   : > { %2390 = vst [vmem:[#allocation18_spill] sm:$0xff] %v1711_v19  ;;  %v1713_v12 = vpop.permute.xlu0 %703 }
 0x112   : > { %v1715_v0 = vpop.permute.xlu1 %537 }
 0x113   : > { %2391 = vst [vmem:[#allocation19_spill] sm:$0xff] %v1715_v0  ;;  %v1717_v3 = vpop.permute.xlu0 %711  ;;  %v1736_v0 = vld [vmem:[%s2365_s1] ss:$0 sm:$0xff] }
 0x114   : > { %2392 = vst [vmem:[#allocation20_spill] sm:$0xff] %v1717_v3 }
 0x116   : > { %v1719_v8 = vpop.permute.xlu1 %545 }
 0x117   : > { %2393 = vst [vmem:[#allocation21_spill] sm:$0xff] %v1719_v8  ;;  %v1721_v36 = vpop.permute.xlu0 %719  ;;  %v252_v8 = vmul.f32 %v1736_v0, %v1562_v24  ;;  %v258_v24 = vmul.f32 %v1736_v0, %v1580_v30  ;;  %v262_v30 = vmul.f32 %v1736_v0, %v1592_v34 }
 0x118   : > { %2394 = vst [vmem:[#allocation22_spill] sm:$0xff] %v1721_v36  ;;  %v251_v36 = vmul.f32 %v1736_v0, %v1556_v22 }
 0x119   : > { %v272_v20 = vadd.f32 %v1756_v6, %v252_v8 }
 0x11b   : > { %v591_v10 = vpop.permute.xlu1 %590  ;;  %v1723_v16 = vpop.permute.xlu0 %727 }
 0x11c   : > { %2395 = vst [vmem:[#allocation23_spill] sm:$0xff] %v1723_v16  ;;  %v256_v16 = vmul.f32 %v1736_v0, %v1574_v28 }
 0x11f   : > { %v1725_v18 = vpop.permute.xlu1 %598  ;;  %v1727_v63 = vpop.permute.xlu0 %735 }
 0x120   : > { %2396 = vst [vmem:[#allocation24_spill] sm:$0xff] %v1727_v63  ;;  %v1747_v63 = vld [vmem:[%s2365_s1 + $0x1] ss:$0 sm:$0xff] }
 0x121   : > { %v359_v3 = vmul.f32 %v1747_v63, %v1570_v27  ;;  %v354_v8 = vmul.f32 %v1747_v63, %v1559_v23  ;;  %v361_v27 = vmul.f32 %v1747_v63, %v1576_v29  ;;  %v365_v23 = vmul.f32 %v1747_v63, %v1588_v33  ;;  %v1799_v29 = vld [vmem:[%s2365_s1 + $0x3] ss:$0 sm:$0xff] }
 0x123   : > { %v1729_v14 = vpop.permute.xlu1 %602  ;;  %v1731_v61 = vpop.permute.xlu0 %743 }
 0x124   : > { %2397 = vst [vmem:[#allocation25_spill] sm:$0xff] %v1731_v61  ;;  %v254_v61 = vmul.f32 %v1736_v0, %v1568_v26  ;;  %v357_v26 = vmul.f32 %v1747_v63, %v1565_v25  ;;  %v278_v25 = vadd.f32 %v1756_v6, %v258_v24  ;;  %v282_v24 = vadd.f32 %v1756_v6, %v262_v30 }
 0x125   : > { %v367_v30 = vmul.f32 %v1747_v63, %v1594_v35 }
 0x126   : > { %v274_v9 = vadd.f32 %v1756_v6, %v254_v61  ;;  %v271_v61 = vadd.f32 %v1756_v6, %v251_v36  ;;  %v373_v7 = vadd.f32 %v357_v26, %v272_v20  ;;  %v1794_v36 = vld [vmem:[%s2365_s1 + $0x2] ss:$0 sm:$0xff] }
 0x127   : > { %v1740_v19 = vpop.permute.xlu1 %610  ;;  %v1742_v11 = vpop.permute.xlu0 %751  ;;  %v459_v35 = vmul.f32 %v1794_v36, %v1608_v39 }
 0x128   : > { %2398 = vst [vmem:[#allocation26_spill] sm:$0xff] %v1742_v11  ;;  %v260_v11 = vmul.f32 %v1736_v0, %v1586_v32  ;;  %v276_v32 = vadd.f32 %v1756_v6, %v256_v16  ;;  %v375_v16 = vadd.f32 %v359_v3, %v274_v9 }
 0x12a   : > { %v377_v3 = vadd.f32 %v361_v27, %v276_v32  ;;  %v556_v32 = vmul.f32 %v1799_v29, %v1644_v51  ;;  %v1837_v51 = vld [vmem:[%s2365_s1 + $0x5] ss:$0 sm:$0xff] }
 0x12b   : > { %v1767_v28 = vpop.permute.xlu1 %618 }
 0x12c   : > { %2399 = vst [vmem:[#allocation27_spill] sm:$0xff] %v1767_v28  ;;  %v168_v17 = vpop.permute.xlu0 %167  ;;  %v280_v28 = vadd.f32 %v1756_v6, %v260_v11 }
 0x12d   : > { %v249_v22 = vmul.f32 %v1736_v0, %v168_v17  ;;  %v363_v17 = vmul.f32 %v1747_v63, %v1582_v31  ;;  %v455_v31 = vmul.f32 %v1794_v36, %v1652_v54 }
 0x12e   : > { %v1806_v26 = vadd.f32 %v365_v23, %v280_v28  ;;  %v456_v28 = vmul.f32 %v1794_v36, %v1602_v37 }
 0x12f   : > { %v269_v34 = vadd.f32 %v1756_v6, %v249_v22  ;;  %v1784_v4 = vpop.permute.xlu1 %626  ;;  %v1804_v20 = vadd.f32 %v363_v17, %v278_v25  ;;  %v356_v22 = vmul.f32 %v1747_v63, %v1611_v40  ;;  %v1819_v25 = vadd.f32 %v367_v30, %v282_v24 }
 0x130   : > { %2400 = vst [vmem:[#allocation28_spill] sm:$0xff] %v1784_v4  ;;  %v173_v11 = vpop.permute.xlu0 %172  ;;  %v355_v4 = vmul.f32 %v1747_v63, %v1605_v38  ;;  %v1827_v40 = vmul.f32 %v1794_v36, %v1614_v41  ;;  %v1832_v38 = vld [vmem:[%s2365_s1 + $0x4] ss:$0 sm:$0xff]  ;;  %v358_v41 = vmul.f32 %v1747_v63, %v1617_v42 }
 0x131   : > { %v370_v9 = vadd.f32 %v354_v8, %v269_v34  ;;  %v250_v33 = vmul.f32 %v1736_v0, %v173_v11  ;;  %v657_v37 = vmul.f32 %v1832_v38, %v591_v10  ;;  %v372_v24 = vadd.f32 %v356_v22, %v271_v61 }
 0x132   : > { %v1845_v11 = vmul.f32 %v1794_v36, %v1620_v43  ;;  %v458_v10 = vmul.f32 %v1794_v36, %v1662_v58  ;;  %v362_v43 = vmul.f32 %v1747_v63, %v1629_v46  ;;  %v1870_v58 = vmul.f32 %v1747_v63, %v1635_v48 }
 0x133   : > { %v471_v54 = vadd.f32 %v455_v31, %v370_v9  ;;  %v270_v8 = vadd.f32 %v1756_v6, %v250_v33  ;;  %v1817_v27 = vpop.permute.xlu1 %634  ;;  %v360_v31 = vmul.f32 %v1747_v63, %v1623_v44  ;;  %v1851_v9 = vmul.f32 %v1794_v36, %v1625_v45 }
 0x134   : > { %v188_v34 = vpop.permute.xlu0 %187  ;;  %v1863_v33 = vmul.f32 %v1794_v36, %v1631_v47  ;;  %v460_v44 = vmul.f32 %v1794_v36, %v1666_v60  ;;  %v1875_v46 = vmul.f32 %v1794_v36, %v1637_v49  ;;  %v1879_v47 = vmul.f32 %v1747_v63, %v1641_v50 }
 0x135   : > { %v572_v17 = vadd.f32 %v556_v32, %v471_v54  ;;  %v371_v23 = vadd.f32 %v355_v4, %v270_v8  ;;  %v253_v39 = vmul.f32 %v1736_v0, %v188_v34  ;;  %v758_v4 = vmul.f32 %v1837_v51, %v1709_v21 }
 0x136   : > { %v457_v60 = vmul.f32 %v1794_v36, %v1657_v56  ;;  %v462_v54 = vmul.f32 %v1794_v36, %v1671_v62  ;;  %v1887_v48 = vmul.f32 %v1747_v63, %v1646_v52  ;;  %v474_v8 = vadd.f32 %v458_v10, %v373_v7 }
 0x137   : > { %v1857_v61 = vpop.permute.xlu1 %642  ;;  %v673_v42 = vadd.f32 %v657_v37, %v572_v17  ;;  %v273_v45 = vadd.f32 %v1756_v6, %v253_v39  ;;  %v472_v21 = vadd.f32 %v456_v28, %v371_v23  ;;  %v557_v28 = vmul.f32 %v1799_v29, %v1691_v1 }
 0x138   : > { %v198_v30 = vpop.permute.xlu0 %197  ;;  %v559_v50 = vmul.f32 %v1799_v29, %v1649_v53  ;;  %v476_v37 = vadd.f32 %v460_v44, %v375_v16  ;;  %v561_v52 = vmul.f32 %v1799_v29, %v1654_v55  ;;  %v563_v7 = vmul.f32 %v1799_v29, %v1659_v57 }
 0x139   : > { %v255_v22 = vmul.f32 %v1736_v0, %v198_v30  ;;  %v774_v32 = vadd.f32 %v758_v4, %v673_v42  ;;  %v374_v56 = vadd.f32 %v358_v41, %v273_v45  ;;  %v573_v23 = vadd.f32 %v557_v28, %v472_v21 }
 0x13a   : > { %v473_v39 = vadd.f32 %v457_v60, %v372_v24  ;;  %v478_v10 = vadd.f32 %v462_v54, %v377_v3  ;;  %v464_v53 = vmul.f32 %v1794_v36, %v1675_v2  ;;  %v558_v16 = vmul.f32 %v1799_v29, %v1695_v13 }
 0x13b   : > { %v1891_v49 = vpop.permute.xlu1 %650  ;;  %v1893_v34 = vmax.f32 %v774_v32, 0.0  ;;  %v275_v17 = vadd.f32 %v1756_v6, %v255_v22  ;;  %v565_v41 = vmul.f32 %v1799_v29, %v1664_v59  ;;  %v658_v55 = vmul.f32 %v1832_v38, %v1681_v5 }
 0x13c   : > { %v208_v62 = vpop.permute.xlu0 %207  ;;  %v575_v57 = vadd.f32 %v559_v50, %v474_v8  ;;  %v660_v4 = vmul.f32 %v1832_v38, %v1729_v14  ;;  %v577_v42 = vadd.f32 %v561_v52, %v476_v37  ;;  %v475_v44 = vadd.f32 %v459_v35, %v374_v56 }
 0x13d   : > { %v257_v1 = vmul.f32 %v1736_v0, %v208_v62  ;;  %810 = vperm.xlu1 %1369, %v1893_v34   ;;  %v376_v24 = vadd.f32 %v360_v31, %v275_v17  ;;  %v659_v13 = vmul.f32 %v1832_v38, %v1725_v18  ;;  %v674_v30 = vadd.f32 %v658_v55, %v573_v23  ;;  %v2401_v62 = vld [vmem:[#allocation7_spill] sm:$0xff] }
 0x13e   : > { %v480_v5 = vadd.f32 %v464_v53, %v1804_v20  ;;  %v574_v22 = vadd.f32 %v558_v16, %v473_v39  ;;  %v560_v14 = vmul.f32 %v1799_v29, %v1699_v15  ;;  %v579_v35 = vadd.f32 %v563_v7, %v478_v10  ;;  %v2405_v53 = vld [vmem:[#allocation27_spill] sm:$0xff] }
 0x13f   : > { %v277_v3 = vadd.f32 %v1756_v6, %v257_v1  ;;  %v761_v31 = vmul.f32 %v1837_v51, %v1713_v12  ;;  %v676_v32 = vadd.f32 %v660_v4, %v575_v57  ;;  %v662_v60 = vmul.f32 %v1832_v38, %v1740_v19  ;;  %v2402_v19 = vld [vmem:[#allocation9_spill] sm:$0xff]  ;;  %v2404_v1 = vld [vmem:[#allocation20_spill] sm:$0xff] }
 0x140   : > { %v696_v45 = vpop.permute.xlu1 %695  ;;  %v218_v2 = vpop.permute.xlu0 %217  ;;  %v477_v54 = vadd.f32 %v1827_v40, %v376_v24  ;;  %v576_v37 = vadd.f32 %v560_v14, %v475_v44  ;;  %v675_v56 = vadd.f32 %v659_v13, %v574_v22  ;;  %v466_v52 = vmul.f32 %v1794_v36, %v2401_v62  ;;  %v2403_v40 = vld [vmem:[#allocation15_spill] sm:$0xff]  ;;  %v2407_v22 = vld [vmem:[#allocation17_spill] sm:$0xff]  ;;  %v2408_v14 = vld [vmem:[#allocation22_spill] sm:$0xff] }
 0x141   : > { %v759_v59 = vmul.f32 %v1837_v51, %v696_v45  ;;  %v259_v21 = vmul.f32 %v1736_v0, %v218_v2  ;;  %v378_v8 = vadd.f32 %v362_v43, %v277_v3  ;;  %v661_v7 = vmul.f32 %v1832_v38, %v2402_v19  ;;  %v2410_v62 = vld [vmem:[#allocation8_spill] sm:$0xff] }
 0x142   : > { %v562_v43 = vmul.f32 %v1799_v29, %v2403_v40  ;;  %v763_v23 = vmul.f32 %v1837_v51, %v2404_v1  ;;  %v777_v39 = vadd.f32 %v761_v31, %v676_v32  ;;  %v678_v10 = vadd.f32 %v662_v60, %v577_v42  ;;  %v2413_v1 = vld [vmem:[#allocation4_spill] sm:$0xff] }
 0x143   : > { %v775_v18 = vadd.f32 %v759_v59, %v674_v30  ;;  %v279_v28 = vadd.f32 %v1756_v6, %v259_v21  ;;  %v664_v16 = vmul.f32 %v1832_v38, %v2405_v53  ;;  %v479_v57 = vadd.f32 %v1845_v11, %v378_v8  ;;  %v2406_v59 = vld [vmem:[#allocation11_spill] sm:$0xff]  ;;  %v2409_v8 = vld [vmem:[#allocation28_spill] sm:$0xff] }
 0x144   : > { %v700_v50 = vpop.permute.xlu1 %699  ;;  %v228_v20 = vpop.permute.xlu0 %227  ;;  %v677_v24 = vadd.f32 %v661_v7, %v576_v37  ;;  %v578_v45 = vadd.f32 %v562_v43, %v477_v54  ;;  %v663_v21 = vmul.f32 %v1832_v38, %v2406_v59  ;;  %v564_v11 = vmul.f32 %v1799_v29, %v2407_v22  ;;  %v2411_v7 = vld [vmem:[#allocation12_spill] sm:$0xff]  ;;  %v2416_v59 = vld [vmem:[#allocation5_spill] sm:$0xff]  ;;  %v2417_v22 = vld [vmem:[#allocation19_spill] sm:$0xff] }
 0x145   : > { %v1928_v17 = vmax.f32 %v775_v18, 0.0  ;;  %v760_v15 = vmul.f32 %v1837_v51, %v700_v50  ;;  %v261_v12 = vmul.f32 %v1736_v0, %v228_v20  ;;  %v380_v4 = vadd.f32 %v1870_v58, %v279_v28 }
 0x146   : > { %v765_v58 = vmul.f32 %v1837_v51, %v2408_v14  ;;  %v581_v31 = vadd.f32 %v565_v41, %v480_v5  ;;  %v1956_v32 = vmax.f32 %v777_v39, 0.0  ;;  %v779_v60 = vadd.f32 %v763_v23, %v678_v10 }
 0x147   : > { %v776_v55 = vadd.f32 %v760_v15, %v675_v56  ;;  %815 = vperm.xlu0 %1368, %v1928_v17   ;;  %v281_v13 = vadd.f32 %v1756_v6, %v261_v12  ;;  %v680_v18 = vadd.f32 %v664_v16, %v579_v35  ;;  %v666_v28 = vmul.f32 %v1832_v38, %v2409_v8 }
 0x148   : > { %v708_v44 = vpop.permute.xlu1 %707  ;;  %v238_v3 = vpop.permute.xlu0 %237  ;;  %v481_v50 = vadd.f32 %v1851_v9, %v380_v4  ;;  %v679_v37 = vadd.f32 %v663_v21, %v578_v45  ;;  %v580_v56 = vadd.f32 %v564_v11, %v479_v57  ;;  %v482_v35 = vadd.f32 %v466_v52, %v1806_v26  ;;  %v2412_v9 = vld [vmem:[#allocation18_spill] sm:$0xff]  ;;  %v2414_v45 = vld [vmem:[#allocation13_spill] sm:$0xff] }
 0x149   : > { %v1945_v2 = vmax.f32 %v776_v55, 0.0  ;;  %v762_v42 = vmul.f32 %v1837_v51, %v708_v44  ;;  %v263_v30 = vmul.f32 %v1736_v0, %v238_v3  ;;  %v382_v15 = vadd.f32 %v1879_v47, %v281_v13 }
 0x14a   : > { %v468_v19 = vmul.f32 %v1794_v36, %v2410_v62  ;;  %v665_v40 = vmul.f32 %v1832_v38, %v2411_v7  ;;  %v566_v43 = vmul.f32 %v1799_v29, %v2412_v9  ;;  %v567_v47 = vmul.f32 %v1799_v29, %v2413_v1  ;;  %v2421_v1 = vld [vmem:[#allocation16_spill] sm:$0xff] }
 0x14b   : > { %v778_v54 = vadd.f32 %v762_v42, %v677_v24  ;;  %820 = vperm.xlu1 %1369, %v1945_v2   ;;  %v283_v41 = vadd.f32 %v1756_v6, %v263_v30  ;;  %v1976_v23 = vmax.f32 %v779_v60, 0.0  ;;  %v781_v39 = vadd.f32 %v765_v58, %v680_v18  ;;  %v2415_v42 = vld [vmem:[#allocation23_spill] sm:$0xff] }
 0x14c   : > { %v716_v20 = vpop.permute.xlu1 %715  ;;  %v682_v26 = vadd.f32 %v666_v28, %v581_v31  ;;  %v668_v52 = vmul.f32 %v1832_v38, %v1817_v27  ;;  %v681_v16 = vadd.f32 %v665_v40, %v580_v56  ;;  %v582_v55 = vadd.f32 %v566_v43, %v481_v50  ;;  %v2418_v50 = vld [vmem:[#allocation24_spill] sm:$0xff]  ;;  %v2419_v56 = vld [vmem:[#allocation14_spill] sm:$0xff] }
 0x14d   : > { %v1963_v12 = vmax.f32 %v778_v54, 0.0  ;;  %v764_v5 = vmul.f32 %v1837_v51, %v716_v20  ;;  %v483_v57 = vadd.f32 %v1863_v33, %v382_v15  ;;  %v384_v4 = vadd.f32 %v1887_v48, %v283_v41  ;;  %v2420_v41 = vld [vmem:[#allocation21_spill] sm:$0xff] }
 0x14e   : > { %v484_v3 = vadd.f32 %v468_v19, %v1819_v25  ;;  %v667_v13 = vmul.f32 %v1832_v38, %v2414_v45  ;;  %v767_v30 = vmul.f32 %v1837_v51, %v2415_v42  ;;  %v583_v27 = vadd.f32 %v567_v47, %v482_v35  ;;  %v2424_v42 = vld [vmem:[#allocation2_spill] sm:$0xff] }
 0x14f   : > { %v780_v10 = vadd.f32 %v764_v5, %v679_v37  ;;  %825 = vperm.xlu1 %1369, %v1956_v32   ;;  %830 = vperm.xlu0 %1368, %v1963_v12   ;;  %v569_v21 = vmul.f32 %v1799_v29, %v2416_v59  ;;  %v568_v33 = vmul.f32 %v1799_v29, %v2417_v22  ;;  %v1996_v48 = vmax.f32 %v781_v39, 0.0  ;;  %v2422_v39 = vld [vmem:[#allocation25_spill] sm:$0xff] }
 0x150   : > { %v724_v53 = vpop.permute.xlu1 %723  ;;  %v783_v25 = vadd.f32 %v767_v30, %v682_v26  ;;  %v684_v14 = vadd.f32 %v668_v52, %v583_v27  ;;  %v670_v58 = vmul.f32 %v1832_v38, %v1857_v61  ;;  %v683_v60 = vadd.f32 %v667_v13, %v582_v55 }
 0x151   : > { %v1984_v44 = vmax.f32 %v780_v10, 0.0  ;;  %v766_v24 = vmul.f32 %v1837_v51, %v724_v53  ;;  %v485_v18 = vadd.f32 %v1875_v46, %v384_v4  ;;  %v584_v28 = vadd.f32 %v568_v33, %v483_v57 }
 0x152   : > { %v769_v20 = vmul.f32 %v1837_v51, %v2418_v50  ;;  %v585_v37 = vadd.f32 %v569_v21, %v484_v3  ;;  %v669_v15 = vmul.f32 %v1832_v38, %v2419_v56  ;;  %v570_v5 = vmul.f32 %v1799_v29, %v2420_v41  ;;  %v2427_v50 = vld [vmem:[#allocation6_spill] sm:$0xff] }
 0x153   : > { %v782_v11 = vadd.f32 %v766_v24, %v681_v16  ;;  %835 = vperm.xlu1 %1369, %v1976_v23   ;;  %840 = vperm.xlu0 %1368, %v1984_v44   ;;  %v2014_v46 = vmax.f32 %v783_v25, 0.0  ;;  %v671_v47 = vmul.f32 %v1832_v38, %v2421_v1  ;;  %v771_v10 = vmul.f32 %v1837_v51, %v2422_v39  ;;  %v2425_v25 = vld [vmem:[#allocation3_spill] sm:$0xff]  ;;  %v2428_v41 = vld [vmem:[#allocation26_spill] sm:$0xff] }
 0x154   : > { %v732_v31 = vpop.permute.xlu1 %731  ;;  %v785_v35 = vadd.f32 %v769_v20, %v684_v14  ;;  %v686_v62 = vadd.f32 %v670_v58, %v585_v37  ;;  %v685_v40 = vadd.f32 %v669_v15, %v584_v28  ;;  %v586_v43 = vadd.f32 %v570_v5, %v485_v18  ;;  %v2426_v18 = vld [vmem:[#allocation10_spill] sm:$0xff] }
 0x155   : > { %v2003_v54 = vmax.f32 %v782_v11, 0.0  ;;  %v768_v8 = vmul.f32 %v1837_v51, %v732_v31  ;;  %v2423_v13 = vmov 1   ;;  %v264_v14 = vmul.f32 %v1736_v0, %v2425_v25  ;;  %v2185_v25 = vld [vmem:[%s2365_s1 + $0xa] ss:$0 sm:$0xff] }
 0x156   : > { %v2025_v52 = vmax.f32 %v785_v35, 0.0  ;;  %v787_v16 = vadd.f32 %v771_v10, %v686_v62  ;;  %v687_v57 = vadd.f32 %v671_v47, %v586_v43  ;;  %v571_v20 = vmul.f32 %v1799_v29, %v2427_v50  ;;  %v2163_v43 = vld [vmem:[%s2365_s1 + $0x9] ss:$0 sm:$0xff] }
 0x157   : > { %v784_v61 = vadd.f32 %v768_v8, %v683_v60  ;;  %845 = vperm.xlu1 %1369, %v1996_v48   ;;  %850 = vperm.xlu0 %1368, %v2003_v54   ;;  %v284_v31 = vadd.f32 %v1756_v6, %v264_v14  ;;  %v470_v8 = vmul.f32 %v1794_v36, %v2426_v18  ;;  %v2430_v36 = vmov 3  }
 0x158   : > { %v740_v19 = vpop.permute.xlu1 %739  ;;  %v2032_v3 = vmax.f32 %v787_v16, 0.0  ;;  %v672_v56 = vmul.f32 %v1832_v38, %v1891_v49  ;;  %v773_v0 = vmul.f32 %v1837_v51, %v2428_v41 }
 0x159   : > { %v2016_v7 = vmax.f32 %v784_v61, 0.0  ;;  %v770_v9 = vmul.f32 %v1837_v51, %v740_v19 }
 0x15b   : > { %v786_v26 = vadd.f32 %v770_v9, %v685_v40  ;;  %855 = vperm.xlu1 %1369, %v2014_v46   ;;  %860 = vperm.xlu0 %1368, %v2016_v7   ;;  %v2158_v9 = vld [vmem:[%s2365_s1 + $0x18] ss:$0 sm:$0xff] }
 0x15c   : > { %v748_v53 = vpop.permute.xlu1 %747 }
 0x15d   : > { %v2027_v55 = vmax.f32 %v786_v26, 0.0  ;;  %v772_v4 = vmul.f32 %v1837_v51, %v748_v53 }
 0x15f   : > { %v788_v24 = vadd.f32 %v772_v4, %v687_v57  ;;  %865 = vperm.xlu1 %1369, %v2025_v52   ;;  %870 = vperm.xlu0 %1368, %v2027_v55  }
 0x161   : > { %v2034_v45 = vmax.f32 %v788_v24, 0.0 }
 0x163   : > { %875 = vperm.xlu1 %1369, %v2032_v3   ;;  %880 = vperm.xlu0 %1368, %v2034_v45  }
 0x167   : > { %1370 = vset.pattern.permute.xlu0 %v2423_v13 }
 0x168   : > { %347 = vperm.xlu0 %1370, %v2424_v42  }
 0x16c   : > { %930 = vperm.xlu0 %1370, %v1893_v34  }
 0x170   : > { %942 = vperm.xlu0 %1370, %v1956_v32  }
 0x174   : > { %950 = vperm.xlu0 %1370, %v1976_v23  }
 0x178   : > { %958 = vperm.xlu0 %1370, %v1996_v48  }
 0x17c   : > { %966 = vperm.xlu0 %1370, %v2014_v46  }
 0x180   : > { %974 = vperm.xlu0 %1370, %v2025_v52  }
 0x184   : > { %982 = vperm.xlu0 %1370, %v2032_v3  }
 0x1bc   : > { %v2110_v29 = vpop.permute.xlu1 %810 }
 0x1c6   : > { %v2047_v30 = vpop.permute.xlu0 %815 }
 0x1ca   : > { %v821_v38 = vpop.permute.xlu1 %820 }
 0x1ce   : > { %v2049_v27 = vpop.permute.xlu0 %830  ;;  %v2117_v49 = vpop.permute.xlu1 %825 }
 0x1d2   : > { %v2051_v59 = vpop.permute.xlu0 %840 }
 0x1d6   : > { %v2053_v21 = vpop.permute.xlu0 %850 }
 0x1da   : > { %v2055_v22 = vpop.permute.xlu0 %860 }
 0x1de   : > { %v2057_v33 = vpop.permute.xlu0 %870 }
 0x1e2   : > { %v2059_v11 = vpop.permute.xlu0 %880 }
 0x1e7   : > { %v348_v58 = vpop.permute.xlu0 %347 }
 0x1e8   : > { %v369_v60 = vmul.f32 %v1747_v63, %v348_v58  ;;  %v2429_v63 = vmov 2  }
 0x1ea   : > { %v385_v28 = vadd.f32 %v369_v60, %v284_v31 }
 0x1eb   : > { %v2113_v51 = vpop.permute.xlu0 %930 }
 0x1ec   : > { %v486_v37 = vadd.f32 %v470_v8, %v385_v28 }
 0x1ee   : > { %v587_v15 = vadd.f32 %v571_v20, %v486_v37 }
 0x1f0   : > { %v688_v5 = vadd.f32 %v672_v56, %v587_v15 }
 0x1f2   : > { %v789_v61 = vadd.f32 %v773_v0, %v688_v5 }
 0x1f4   : > { %v805_v6 = vmax.f32 %v789_v61, 0.0 }
 0x1f6   : > { %990 = vperm.xlu0 %1370, %v805_v6   ;;  %885 = vperm.xlu1 %1369, %v805_v6  }
 0x1fa   : > { %1373 = vset.pattern.permute.xlu0 %v2429_v63  ;;  %1371 = vset.pattern.permute.xlu1 %v2423_v13 }
 0x1fb   : > { %1035 = vperm.xlu0 %1373, %v1928_v17   ;;  %934 = vperm.xlu1 %1371, %v1928_v17  }
 0x1ff   : > { %1047 = vperm.xlu0 %1373, %v1963_v12   ;;  %938 = vperm.xlu1 %1371, %v1945_v2  }
 0x203   : > { %1055 = vperm.xlu0 %1373, %v1984_v44   ;;  %946 = vperm.xlu1 %1371, %v1963_v12  }
 0x207   : > { %1063 = vperm.xlu0 %1373, %v2003_v54   ;;  %954 = vperm.xlu1 %1371, %v1984_v44  }
 0x20b   : > { %1071 = vperm.xlu0 %1373, %v2016_v7   ;;  %962 = vperm.xlu1 %1371, %v2003_v54  }
 0x20f   : > { %1079 = vperm.xlu0 %1373, %v2027_v55   ;;  %970 = vperm.xlu1 %1371, %v2016_v7  }
 0x213   : > { %1087 = vperm.xlu0 %1373, %v2034_v45   ;;  %978 = vperm.xlu1 %1371, %v2027_v55  }
 0x217   : > { %1374 = vset.pattern.permute.xlu0 %v2430_v36  ;;  %986 = vperm.xlu1 %1371, %v2034_v45  }
 0x218   : > { %1132 = vperm.xlu0 %1374, %v1893_v34  }
 0x21b   : > { %1372 = vset.pattern.permute.xlu1 %v2429_v63 }
 0x21c   : > { %1144 = vperm.xlu0 %1374, %v1956_v32   ;;  %1031 = vperm.xlu1 %1372, %v1893_v34   ;;  %v2119_v34 = vpop.permute.xlu0 %942 }
 0x220   : > { %1152 = vperm.xlu0 %1374, %v1976_v23   ;;  %1039 = vperm.xlu1 %1372, %v1945_v2  }
 0x224   : > { %1160 = vperm.xlu0 %1374, %v1996_v48   ;;  %1043 = vperm.xlu1 %1372, %v1956_v32  }
 0x228   : > { %1168 = vperm.xlu0 %1374, %v2014_v46   ;;  %1051 = vperm.xlu1 %1372, %v1976_v23  }
 0x22c   : > { %1176 = vperm.xlu0 %1374, %v2025_v52   ;;  %1059 = vperm.xlu1 %1372, %v1996_v48  }
 0x230   : > { %1184 = vperm.xlu0 %1374, %v2032_v3   ;;  %1067 = vperm.xlu1 %1372, %v2014_v46  }
 0x234   : > { %1192 = vperm.xlu0 %1374, %v805_v6   ;;  %1075 = vperm.xlu1 %1372, %v2025_v52  }
 0x238   : > { %1083 = vperm.xlu1 %1372, %v2032_v3  }
 0x23c   : > { %1091 = vperm.xlu1 %1372, %v805_v6  }
 0x240   : > { %1375 = vset.pattern.permute.xlu1 %v2430_v36 }
 0x241   : > { %1136 = vperm.xlu1 %1375, %v1928_v17   ;;  %v2122_v17 = vpop.permute.xlu1 %835 }
 0x245   : > { %1140 = vperm.xlu1 %1375, %v1945_v2   ;;  %v2124_v2 = vpop.permute.xlu0 %950  ;;  %v2128_v32 = vpop.permute.xlu1 %845 }
 0x249   : > { %1148 = vperm.xlu1 %1375, %v1963_v12   ;;  %v2130_v12 = vpop.permute.xlu0 %958  ;;  %v2132_v23 = vpop.permute.xlu1 %855 }
 0x24d   : > { %1156 = vperm.xlu1 %1375, %v1984_v44   ;;  %v2134_v44 = vpop.permute.xlu0 %966  ;;  %v2136_v48 = vpop.permute.xlu1 %865 }
 0x251   : > { %1164 = vperm.xlu1 %1375, %v2003_v54   ;;  %v2138_v54 = vpop.permute.xlu0 %974  ;;  %v2140_v46 = vpop.permute.xlu1 %875 }
 0x255   : > { %1172 = vperm.xlu1 %1375, %v2016_v7   ;;  %v2142_v35 = vpop.permute.xlu0 %982  ;;  %v2151_v7 = vld [vmem:[%s2365_s1 + $0x8] ss:$0 sm:$0xff] }
 0x256   : > { %v893_v40 = vmul.f32 %v2151_v7, %v2047_v30  ;;  %v894_v10 = vmul.f32 %v2151_v7, %v821_v38  ;;  %v896_v57 = vmul.f32 %v2151_v7, %v2049_v27  ;;  %v898_v42 = vmul.f32 %v2151_v7, %v2051_v59 }
 0x257   : > { %v900_v18 = vmul.f32 %v2151_v7, %v2053_v21  ;;  %v902_v15 = vmul.f32 %v2151_v7, %v2055_v22  ;;  %v904_v36 = vmul.f32 %v2151_v7, %v2057_v33 }
 0x258   : > { %v913_v39 = vadd.f32 %v2158_v9, %v893_v40  ;;  %v916_v13 = vadd.f32 %v2158_v9, %v896_v57  ;;  %v918_v60 = vadd.f32 %v2158_v9, %v898_v42 }
 0x259   : > { %1180 = vperm.xlu1 %1375, %v2027_v55   ;;  %v914_v55 = vadd.f32 %v2158_v9, %v894_v10  ;;  %v920_v56 = vadd.f32 %v2158_v9, %v900_v18  ;;  %v922_v63 = vadd.f32 %v2158_v9, %v902_v15  ;;  %v1000_v15 = vmul.f32 %v2163_v43, %v2119_v34 }
 0x25a   : > { %v1002_v34 = vmul.f32 %v2163_v43, %v2124_v2 }
 0x25d   : > { %1188 = vperm.xlu1 %1375, %v2034_v45  }
 0x275   : > { %v2144_v62 = vpop.permute.xlu1 %885  ;;  %v2146_v19 = vpop.permute.xlu0 %990 }
 0x27a   : > { %v935_v1 = vpop.permute.xlu1 %934  ;;  %v2165_v47 = vpop.permute.xlu0 %1035 }
 0x27b   : > { %v998_v26 = vmul.f32 %v2163_v43, %v935_v1 }
 0x27d   : > { %v2170_v52 = vadd.f32 %v998_v26, %v913_v39  ;;  %v924_v26 = vadd.f32 %v2158_v9, %v904_v36 }
 0x27e   : > { %v939_v53 = vpop.permute.xlu1 %938  ;;  %v1048_v16 = vpop.permute.xlu0 %1047 }
 0x27f   : > { %v999_v4 = vmul.f32 %v2163_v43, %v939_v53  ;;  %v1102_v27 = vmul.f32 %v2185_v25, %v1048_v16  ;;  %v906_v53 = vmul.f32 %v2151_v7, %v2059_v11  ;;  %v997_v11 = vmul.f32 %v2163_v43, %v2113_v51 }
 0x280   : > { %v895_v51 = vmul.f32 %v2151_v7, %v2117_v49 }
 0x281   : > { %v2176_v24 = vadd.f32 %v999_v4, %v914_v55  ;;  %v892_v4 = vmul.f32 %v2151_v7, %v2110_v29  ;;  %v2229_v29 = vld [vmem:[%s2365_s1 + $0xb] ss:$0 sm:$0xff] }
 0x282   : > { %v947_v3 = vpop.permute.xlu1 %946  ;;  %v1056_v45 = vpop.permute.xlu0 %1055  ;;  %v915_v49 = vadd.f32 %v2158_v9, %v895_v51  ;;  %v1008_v51 = vmul.f32 %v2163_v43, %v2138_v54 }
 0x283   : > { %v1001_v30 = vmul.f32 %v2163_v43, %v947_v3  ;;  %v1104_v28 = vmul.f32 %v2185_v25, %v1056_v45  ;;  %v926_v45 = vadd.f32 %v2158_v9, %v906_v53  ;;  %v1004_v53 = vmul.f32 %v2163_v43, %v2130_v12 }
 0x284   : > { %v1016_v36 = vadd.f32 %v1000_v15, %v915_v49  ;;  %v1006_v12 = vmul.f32 %v2163_v43, %v2134_v44 }
 0x285   : > { %v1017_v14 = vadd.f32 %v1001_v30, %v916_v13 }
 0x286   : > { %v955_v58 = vpop.permute.xlu1 %954  ;;  %v1064_v31 = vpop.permute.xlu0 %1063 }
 0x287   : > { %v1003_v8 = vmul.f32 %v2163_v43, %v955_v58  ;;  %v2192_v59 = vadd.f32 %v1102_v27, %v1017_v14  ;;  %v1106_v21 = vmul.f32 %v2185_v25, %v1064_v31  ;;  %v912_v58 = vadd.f32 %v2158_v9, %v892_v4 }
 0x289   : > { %v1019_v50 = vadd.f32 %v1003_v8, %v918_v60  ;;  %v1013_v8 = vadd.f32 %v997_v11, %v912_v58  ;;  %v903_v58 = vmul.f32 %v2151_v7, %v2136_v48 }
 0x28a   : > { %v963_v20 = vpop.permute.xlu1 %962  ;;  %v1072_v37 = vpop.permute.xlu0 %1071 }
 0x28b   : > { %v1005_v41 = vmul.f32 %v2163_v43, %v963_v20  ;;  %v2199_v0 = vadd.f32 %v1104_v28, %v1019_v50  ;;  %v1108_v22 = vmul.f32 %v2185_v25, %v1072_v37  ;;  %v923_v15 = vadd.f32 %v2158_v9, %v903_v58 }
 0x28d   : > { %v1021_v5 = vadd.f32 %v1005_v41, %v920_v56 }
 0x28e   : > { %v971_v61 = vpop.permute.xlu1 %970  ;;  %v1080_v6 = vpop.permute.xlu0 %1079 }
 0x28f   : > { %v1007_v38 = vmul.f32 %v2163_v43, %v971_v61  ;;  %v2206_v40 = vadd.f32 %v1106_v21, %v1021_v5  ;;  %v1110_v33 = vmul.f32 %v2185_v25, %v1080_v6  ;;  %v897_v21 = vmul.f32 %v2151_v7, %v2122_v17  ;;  %v1376_v5 = vld [vmem:[%s1439_s15] sm:$0xff] }
 0x291   : > { %v1023_v1 = vadd.f32 %v1007_v38, %v922_v63 }
 0x292   : > { %v979_v39 = vpop.permute.xlu1 %978  ;;  %v1088_v10 = vpop.permute.xlu0 %1087 }
 0x293   : > { %v1009_v16 = vmul.f32 %v2163_v43, %v979_v39  ;;  %v2213_v55 = vadd.f32 %v1108_v22, %v1023_v1  ;;  %v1112_v27 = vmul.f32 %v2185_v25, %v1088_v10  ;;  %v899_v22 = vmul.f32 %v2151_v7, %v2128_v32 }
 0x294   : > { %v917_v1 = vadd.f32 %v2158_v9, %v897_v21  ;;  %v901_v32 = vmul.f32 %v2151_v7, %v2132_v23  ;;  %v1379_v21 = vld [vmem:[%s1439_s15 + $0x38] sm:$0xff] }
 0x295   : > { %v1025_v57 = vadd.f32 %v1009_v16, %v924_v26 }
 0x296   : > { %v987_v3 = vpop.permute.xlu1 %986  ;;  %v1018_v26 = vadd.f32 %v1002_v34, %v917_v1  ;;  %v921_v23 = vadd.f32 %v2158_v9, %v901_v32 }
 0x297   : > { %v1011_v13 = vmul.f32 %v2163_v43, %v987_v3  ;;  %v1133_v42 = vpop.permute.xlu0 %1132  ;;  %v2220_v30 = vadd.f32 %v1110_v33, %v1025_v57  ;;  %v919_v33 = vadd.f32 %v2158_v9, %v899_v22  ;;  %v1377_v3 = vld [vmem:[%s1439_s15 + $0x18] sm:$0xff] }
 0x298   : > { %v1199_v50 = vmul.f32 %v2229_v29, %v1133_v42 }
 0x299   : > { %v1027_v14 = vadd.f32 %v1011_v13, %v926_v45  ;;  %v1020_v11 = vadd.f32 %v1004_v53, %v919_v33  ;;  %v1381_v33 = vld [vmem:[%s1439_s15 + $0x58] sm:$0xff] }
 0x29b   : > { %v1032_v31 = vpop.permute.xlu1 %1031  ;;  %v1145_v60 = vpop.permute.xlu0 %1144  ;;  %v2231_v18 = vadd.f32 %v1112_v27, %v1027_v14 }
 0x29c   : > { %v1098_v28 = vmul.f32 %v2185_v25, %v1032_v31  ;;  %v1202_v17 = vmul.f32 %v2229_v29, %v1145_v60  ;;  %v1378_v60 = vld [vmem:[%s1439_s15 + $0x28] sm:$0xff] }
 0x29e   : > { %v1114_v20 = vadd.f32 %v1098_v28, %v1013_v8 }
 0x29f   : > { %v2237_v37 = vpop.permute.xlu1 %1039  ;;  %v1153_v56 = vpop.permute.xlu0 %1152 }
 0x2a0   : > { %v1215_v41 = vadd.f32 %v1199_v50, %v1114_v20  ;;  %v1204_v4 = vmul.f32 %v2229_v29, %v1153_v56  ;;  %v1022_v20 = vadd.f32 %v1006_v12, %v921_v23  ;;  %v1099_v12 = vmul.f32 %v2185_v25, %v2165_v47 }
 0x2a1   : > { %v1100_v23 = vmul.f32 %v2185_v25, %v2237_v37 }
 0x2a2   : > { %v1231_v61 = vadd.f32 %v1376_v5, %v1215_v41  ;;  %v905_v41 = vmul.f32 %v2151_v7, %v2140_v46  ;;  %v1115_v58 = vadd.f32 %v1099_v12, %v2170_v52 }
 0x2a3   : > { %v1044_v6 = vpop.permute.xlu1 %1043  ;;  %v1161_v63 = vpop.permute.xlu0 %1160 }
 0x2a4   : > { %1248 = vst.msk [vmem:[%s2246_s18] sm:$0xff] %vm1247_vm0, %v1231_v61  ;;  %v1101_v38 = vmul.f32 %v2185_v25, %v1044_v6  ;;  %v1206_v31 = vmul.f32 %v2229_v29, %v1161_v63  ;;  %v1024_v61 = vadd.f32 %v1008_v51, %v923_v15  ;;  %v1010_v63 = vmul.f32 %v2163_v43, %v2142_v35 }
 0x2a5   : > { %v925_v22 = vadd.f32 %v2158_v9, %v905_v41  ;;  %v1116_v51 = vadd.f32 %v1100_v23, %v2176_v24  ;;  %v1386_v41 = vld [vmem:[%s1439_s15 + $0x20] sm:$0xff] }
 0x2a6   : > { %v1117_v39 = vadd.f32 %v1101_v38, %v1016_v36  ;;  %v907_v36 = vmul.f32 %v2151_v7, %v2144_v62 }
 0x2a7   : > { %v1052_v10 = vpop.permute.xlu1 %1051  ;;  %v1169_v57 = vpop.permute.xlu0 %1168  ;;  %v1026_v35 = vadd.f32 %v1010_v63, %v925_v22 }
 0x2a8   : > { %v1218_v2 = vadd.f32 %v1202_v17, %v1117_v39  ;;  %v1103_v16 = vmul.f32 %v2185_v25, %v1052_v10  ;;  %v1208_v49 = vmul.f32 %v2229_v29, %v1169_v57  ;;  %v1380_v17 = vld [vmem:[%s1439_s15 + $0x48] sm:$0xff]  ;;  %v927_v53 = vadd.f32 %v2158_v9, %v907_v36 }
 0x2aa   : > { %v1234_v45 = vadd.f32 %v1377_v3, %v1218_v2  ;;  %v1119_v13 = vadd.f32 %v1103_v16, %v1018_v26  ;;  %v1012_v2 = vmul.f32 %v2163_v43, %v2146_v19 }
 0x2ab   : > { %v1060_v42 = vpop.permute.xlu1 %1059  ;;  %v1177_v44 = vpop.permute.xlu0 %1176 }
 0x2ac   : > { %1251 = vst.msk [vmem:[%s2246_s18 + $0x18] sm:$0xff] %vm1247_vm0, %v1234_v45  ;;  %v1220_v27 = vadd.f32 %v1204_v4, %v1119_v13  ;;  %v1105_v14 = vmul.f32 %v2185_v25, %v1060_v42  ;;  %v1210_v1 = vmul.f32 %v2229_v29, %v1177_v44  ;;  %v1028_v45 = vadd.f32 %v1012_v2, %v927_v53  ;;  %v1384_v44 = vld [vmem:[%s1439_s15 + $0x8] sm:$0xff] }
 0x2ae   : > { %v1236_v8 = vadd.f32 %v1378_v60, %v1220_v27  ;;  %v1121_v28 = vadd.f32 %v1105_v14, %v1020_v11  ;;  %v1382_v11 = vld [vmem:[%s1439_s15 + $0x68] sm:$0xff]  ;;  %v1383_v60 = vld [vmem:[%s1439_s15 + $0x78] sm:$0xff] }
 0x2af   : > { %v1068_v50 = vpop.permute.xlu1 %1067  ;;  %v1185_v38 = vpop.permute.xlu0 %1184 }
 0x2b0   : > { %1253 = vst.msk [vmem:[%s2246_s18 + $0x28] sm:$0xff] %vm1247_vm0, %v1236_v8  ;;  %v1222_v56 = vadd.f32 %v1206_v31, %v1121_v28  ;;  %v1107_v48 = vmul.f32 %v2185_v25, %v1068_v50  ;;  %v1212_v16 = vmul.f32 %v2229_v29, %v1185_v38 }
 0x2b2   : > { %v1238_v5 = vadd.f32 %v1379_v21, %v1222_v56  ;;  %v1123_v54 = vadd.f32 %v1107_v48, %v1022_v20  ;;  %v1385_v20 = vld [vmem:[%s1439_s15 + $0x10] sm:$0xff] }
 0x2b3   : > { %v1076_v6 = vpop.permute.xlu1 %1075  ;;  %v1193_v4 = vpop.permute.xlu0 %1192 }
 0x2b4   : > { %1255 = vst.msk [vmem:[%s2246_s18 + $0x38] sm:$0xff] %vm1247_vm0, %v1238_v5  ;;  %v1224_v34 = vadd.f32 %v1208_v49, %v1123_v54  ;;  %v1109_v46 = vmul.f32 %v2185_v25, %v1076_v6  ;;  %v1214_v42 = vmul.f32 %v2229_v29, %v1193_v4 }
 0x2b6   : > { %v1240_v39 = vadd.f32 %v1380_v17, %v1224_v34  ;;  %v1125_v10 = vadd.f32 %v1109_v46, %v1024_v61  ;;  %v1387_v61 = vld [vmem:[%s1439_s15 + $0x30] sm:$0xff]  ;;  %v1388_v34 = vld [vmem:[%s1439_s15 + $0x40] sm:$0xff] }
 0x2b7   : > { %v1084_v26 = vpop.permute.xlu1 %1083 }
 0x2b8   : > { %1257 = vst.msk [vmem:[%s2246_s18 + $0x48] sm:$0xff] %vm1247_vm0, %v1240_v39  ;;  %v1226_v62 = vadd.f32 %v1210_v1, %v1125_v10  ;;  %v1111_v7 = vmul.f32 %v2185_v25, %v1084_v26  ;;  %v1389_v1 = vld [vmem:[%s1439_s15 + $0x50] sm:$0xff]  ;;  %v1390_v26 = vld [vmem:[%s1439_s15 + $0x60] sm:$0xff] }
 0x2ba   : > { %v1242_v57 = vadd.f32 %v1381_v33, %v1226_v62  ;;  %v1127_v32 = vadd.f32 %v1111_v7, %v1026_v35  ;;  %v1391_v7 = vld [vmem:[%s1439_s15 + $0x70] sm:$0xff] }
 0x2bb   : > { %v1092_v3 = vpop.permute.xlu1 %1091 }
 0x2bc   : > { %1259 = vst.msk [vmem:[%s2246_s18 + $0x58] sm:$0xff] %vm1247_vm0, %v1242_v57  ;;  %v1228_v9 = vadd.f32 %v1212_v16, %v1127_v32  ;;  %v1113_v13 = vmul.f32 %v2185_v25, %v1092_v3 }
 0x2be   : > { %v1244_v19 = vadd.f32 %v1382_v11, %v1228_v9  ;;  %v1129_v43 = vadd.f32 %v1113_v13, %v1028_v45 }
 0x2c0   : > { %1261 = vst.msk [vmem:[%s2246_s18 + $0x68] sm:$0xff] %vm1247_vm0, %v1244_v19  ;;  %v1230_v27 = vadd.f32 %v1214_v42, %v1129_v43  ;;  %v1137_v14 = vpop.permute.xlu1 %1136 }
 0x2c1   : > { %v1200_v31 = vmul.f32 %v2229_v29, %v1137_v14 }
 0x2c2   : > { %v1246_v8 = vadd.f32 %v1383_v60, %v1230_v27 }
 0x2c3   : > { %v1216_v28 = vadd.f32 %v1200_v31, %v1115_v58 }
 0x2c4   : > { %1263 = vst.msk [vmem:[%s2246_s18 + $0x78] sm:$0xff] %vm1247_vm0, %v1246_v8  ;;  %v1141_v47 = vpop.permute.xlu1 %1140 }
 0x2c5   : > { %v1232_v50 = vadd.f32 %v1384_v44, %v1216_v28  ;;  %v1201_v52 = vmul.f32 %v2229_v29, %v1141_v47 }
 0x2c7   : > { %1249 = vst.msk [vmem:[%s2246_s18 + $0x8] sm:$0xff] %vm1247_vm0, %v1232_v50  ;;  %v1217_v25 = vadd.f32 %v1201_v52, %v1116_v51 }
 0x2c8   : > { %v1149_v37 = vpop.permute.xlu1 %1148 }
 0x2c9   : > { %v1233_v56 = vadd.f32 %v1385_v20, %v1217_v25  ;;  %v1203_v48 = vmul.f32 %v2229_v29, %v1149_v37 }
 0x2cb   : > { %1250 = vst.msk [vmem:[%s2246_s18 + $0x10] sm:$0xff] %vm1247_vm0, %v1233_v56  ;;  %v1219_v24 = vadd.f32 %v1203_v48, %v2192_v59 }
 0x2cc   : > { %v1157_v15 = vpop.permute.xlu1 %1156 }
 0x2cd   : > { %v1235_v49 = vadd.f32 %v1386_v41, %v1219_v24  ;;  %v1205_v21 = vmul.f32 %v2229_v29, %v1157_v15 }
 0x2cf   : > { %1252 = vst.msk [vmem:[%s2246_s18 + $0x20] sm:$0xff] %vm1247_vm0, %v1235_v49  ;;  %v1221_v5 = vadd.f32 %v1205_v21, %v2199_v0 }
 0x2d0   : > { %v1165_v54 = vpop.permute.xlu1 %1164 }
 0x2d1   : > { %v1237_v6 = vadd.f32 %v1387_v61, %v1221_v5  ;;  %v1207_v63 = vmul.f32 %v2229_v29, %v1165_v54 }
 0x2d3   : > { %1254 = vst.msk [vmem:[%s2246_s18 + $0x30] sm:$0xff] %vm1247_vm0, %v1237_v6  ;;  %v1223_v59 = vadd.f32 %v1207_v63, %v2206_v40 }
 0x2d4   : > { %v1173_v36 = vpop.permute.xlu1 %1172 }
 0x2d5   : > { %v1239_v46 = vadd.f32 %v1388_v34, %v1223_v59  ;;  %v1209_v38 = vmul.f32 %v2229_v29, %v1173_v36 }
 0x2d7   : > { %1256 = vst.msk [vmem:[%s2246_s18 + $0x40] sm:$0xff] %vm1247_vm0, %v1239_v46  ;;  %v1225_v0 = vadd.f32 %v1209_v38, %v2213_v55 }
 0x2d8   : > { %v1181_v22 = vpop.permute.xlu1 %1180 }
 0x2d9   : > { %v1241_v17 = vadd.f32 %v1389_v1, %v1225_v0  ;;  %v1211_v39 = vmul.f32 %v2229_v29, %v1181_v22 }
 0x2db   : > { %1258 = vst.msk [vmem:[%s2246_s18 + $0x50] sm:$0xff] %vm1247_vm0, %v1241_v17  ;;  %v1227_v40 = vadd.f32 %v1211_v39, %v2220_v30 }
 0x2dc   : > { %v1189_v10 = vpop.permute.xlu1 %1188 }
 0x2dd   : > { %v1243_v35 = vadd.f32 %v1390_v26, %v1227_v40  ;;  %v1213_v53 = vmul.f32 %v2229_v29, %v1189_v10 }
 0x2df   : > { %1260 = vst.msk [vmem:[%s2246_s18 + $0x60] sm:$0xff] %vm1247_vm0, %v1243_v35  ;;  %v1229_v62 = vadd.f32 %v1213_v53, %v2231_v18 }
 0x2e1   : > { %v1245_v55 = vadd.f32 %v1391_v7, %v1229_v62 }
 0x2e3   : > { %1262 = vst.msk [vmem:[%s2246_s18 + $0x70] sm:$0xff] %vm1247_vm0, %v1245_v55 }
 0x2e4 PF: > { %s12_s9 = sadd.s32 1, %s1398_s9  }
 0x2e5   : > { %p9_p4 = scmp.ge.s32.totalorder %s12_s9, 4  }
 0x2e7   :  { %11 = sbr.rel (!%p9_p4) target bundleno = 1 (0x1), region = 58 }

</bundles_post_ra>
